<compile_context>
chip_gen: v6e
topology: v6e:2x2x1
jax: 0.10.0
libtpu: 0.0.40
codegen_flags: <defaults>
</compile_context>

<pallas_src>
import functools

import jax
import jax.numpy as jnp
from jax.experimental import pallas as pl
from jax.experimental.pallas import tpu as pltpu

LN_EPS = 1e-5  # torch.nn.LayerNorm default


def _round_up(a, m):
    return ((a + m - 1) // m) * m


def _choose_tiling(n_rows, row_bytes, target_bytes):
    """Pick (tile_rows, num_steps, padded_rows) for the row grid axis."""
    if n_rows <= 8 or n_rows * row_bytes <= target_bytes:
        padded = _round_up(n_rows, 8) if n_rows < 8 else n_rows   # single full-array block
        return padded, 1, padded
    base = max(8, (target_bytes // row_bytes) // 8 * 8)
    hi = min(2 * base, (n_rows // 8) * 8)
    lo = max(8, (base // 2) // 8 * 8)
    best = 0
    # Prefer a tile that divides n_rows (no pad copy) and an even step count
    # (v7x: two TensorCores split the "parallel" grid axis).
    for want_even in (True, False):
        for cand in range(hi, lo - 1, -8):
            if n_rows % cand == 0 and (not want_even or (n_rows // cand) % 2 == 0):
                best = cand
                break
        if best:
            break
    if best == 0:
        best = base
    padded = _round_up(n_rows, best)
    return best, padded // best, padded


def _feature_attention_kernel(x_ref, gamma_ref, beta_ref, w1_ref, b1_ref, w2_ref,
                              seg_ref, b2_ref, o_ref, *,
                              inv_d, packed, matmul_dtype, approx_sigmoid):
    # x_ref/o_ref: (TILE, W)   gamma/beta/b1/w2: (1, W) f32   w1: (W, W) [matmul_dtype]
    # seg_ref: (W, W) f32 block-diagonal ones (packed path; unused dummy otherwise)
    # b2_ref: (1,) scalar in SMEM
    x = x_ref[...].astype(jnp.float32)

    # --- LayerNorm over each logical D-wide segment (biased variance, torch semantics),
    #     f32 stats.  Packed path: segmented sum + broadcast rides the MXU via the
    #     block-diagonal ones matrix. ---
    if packed:
        seg = seg_ref[...]
        mean = jnp.dot(x, seg, preferred_element_type=jnp.float32) * inv_d
        centered = x - mean
        var = jnp.dot(centered * centered, seg, preferred_element_type=jnp.float32) * inv_d
    else:
        mean = jnp.mean(x, axis=-1, keepdims=True)
        centered = x - mean
        var = jnp.mean(centered * centered, axis=-1, keepdims=True)
    x_norm = centered * jax.lax.rsqrt(var + LN_EPS) * gamma_ref[...] + beta_ref[...]

    # --- Linear(D, D) (block-diagonal when packed) on the MXU; f32 accumulation ---
    h = jnp.dot(x_norm.astype(matmul_dtype), w1_ref[...], preferred_element_type=jnp.float32)
    h = jnp.tanh(h + b1_ref[...])

    # --- Linear(D, 1): VPU multiply by lane-dense w2, then segmented sum (+ broadcast) ---
    hw = h * w2_ref[...]
    if packed:
        logit = jnp.dot(hw, seg_ref[...], preferred_element_type=jnp.float32) + b2_ref[0]
    else:
        logit = jnp.sum(hw, axis=-1, keepdims=True) + b2_ref[0]

    # --- Sigmoid on the EUP slot; optional approx reciprocal ---
    if approx_sigmoid:
        scores = pl.reciprocal(1.0 + jnp.exp(-logit), approx=True)
    else:
        scores = jax.nn.sigmoid(logit)

    # --- gated residual: x * (1 + scores); full-lane (unmasked) store when packed ---
    o_ref[...] = (x * (1.0 + scores)).astype(o_ref.dtype)


def feature_attention(x, gamma, beta, w1, b1, w2, b2, *,
                      target_block_bytes=2 << 20, use_bf16_matmul=True,
                      approx_sigmoid=False, out_dtype=None):
    """x: (..., D).  Math layout: h = tanh(LN(x) @ w1 + b1); s = sigmoid(h @ w2 + b2)."""
    orig_shape = x.shape
    d = int(orig_shape[-1])
    out_dtype = jnp.dtype(x.dtype if out_dtype is None else out_dtype)
    x2 = x.reshape(-1, d)
    n = x2.shape[0]

    # ---- lane-dense packing: g logical rows per 128-lane physical row (free reshape) ----
    g = 128 // d if (d < 128 and 128 % d == 0) else 1
    w = g * d
    n_g = _round_up(n, g)
    if n_g != n:                                    # rare: only when n % g != 0
        x2 = jnp.pad(x2, ((0, n_g - n), (0, 0)))
    xp = x2.reshape(n_g // g, w)
    n_rows = xp.shape[0]

    x_itm = jnp.dtype(x.dtype).itemsize
    o_itm = out_dtype.itemsize
    tile_rows, num_steps, n_pad = _choose_tiling(n_rows, w * x_itm, int(target_block_bytes))
    if n_pad != n_rows:
        xp = jnp.pad(xp, ((0, n_pad - n_rows), (0, 0)))   # padded rows discarded at the end

    matmul_dtype = jnp.bfloat16 if use_bf16_matmul else jnp.float32
    w1_itm = jnp.dtype(matmul_dtype).itemsize

    # ---- parameter prep (all lane-dense, width w) ----
    gamma_r = jnp.tile(gamma.reshape(1, d).astype(jnp.float32), (1, g))
    beta_r = jnp.tile(beta.reshape(1, d).astype(jnp.float32), (1, g))
    b1_r = jnp.tile(b1.reshape(1, d).astype(jnp.float32), (1, g))
    w2_r = jnp.tile(w2.reshape(1, d).astype(jnp.float32), (1, g))    # (D,1) -> lane-dense (1,w)
    if g > 1:
        eye_g = jnp.eye(g, dtype=jnp.float32)
        w1_b = jnp.kron(eye_g, w1.astype(jnp.float32)).astype(matmul_dtype)  # block-diag (w,w)
        seg = jnp.kron(eye_g, jnp.ones((d, d), jnp.float32))                 # segmented-sum matrix
    else:
        w1_b = w1.astype(matmul_dtype)
        seg = jnp.zeros((8, 128), jnp.float32)   # unused dummy on the unpacked path
    b2_s = b2.reshape(1).astype(jnp.float32)     # true scalar -> SMEM

    # ---- VMEM budget: double-buffered in/out blocks + parameter blocks, with headroom;
    #      cap well below physical VMEM (v7x: 64 MiB/TC; v5e/v6e: 128 MiB). ----
    try:
        vmem_cap = int(getattr(pltpu.get_tpu_info(), "vmem_capacity_bytes", 64 << 20))
    except Exception:
        vmem_cap = 64 << 20
    block_bytes = tile_rows * w * (x_itm + o_itm)
    param_bytes = w * w * w1_itm + seg.size * 4 + 5 * w * 4
    vmem_est = 2 * block_bytes + 2 * param_bytes + (1 << 20)
    vmem_limit = int(min(max(2 * vmem_est, 16 << 20), max(int(0.75 * vmem_cap), 32 << 20)))

    n_stats_mm = 3 if g > 1 else 0   # mean, var, logit segmented reductions on the MXU
    cost = pl.CostEstimate(
        flops=n_pad * (2 * w * w * (1 + n_stats_mm) + 12 * w),
        transcendentals=n_pad * 2 * w,
        bytes_accessed=n_pad * w * (x_itm + o_itm) + w * w * w1_itm + seg.size * 4 + 5 * w * 4,
    )

    kernel = functools.partial(
        _feature_attention_kernel,
        inv_d=1.0 / d, packed=(g > 1),
        matmul_dtype=matmul_dtype, approx_sigmoid=approx_sigmoid)

    out = pl.pallas_call(
        kernel,
        out_shape=jax.ShapeDtypeStruct((n_pad, w), out_dtype),
        grid_spec=pltpu.PrefetchScalarGridSpec(
            num_scalar_prefetch=0,
            grid=(num_steps,),
            in_specs=[
                pl.BlockSpec((tile_rows, w), lambda i: (i, 0)),        # x rows (lane-dense)
                pl.BlockSpec((1, w), lambda i: (0, 0)),                # gamma
                pl.BlockSpec((1, w), lambda i: (0, 0)),                # beta
                pl.BlockSpec((w, w), lambda i: (0, 0)),                # w1 (block-diagonal)
                pl.BlockSpec((1, w), lambda i: (0, 0)),                # b1
                pl.BlockSpec((1, w), lambda i: (0, 0)),                # w2 (lane-dense)
                pl.BlockSpec(seg.shape, lambda i: (0, 0)),             # segmented-sum matrix
                pl.BlockSpec(memory_space=pltpu.MemorySpace.SMEM),     # b2 scalar
            ],
            out_specs=pl.BlockSpec((tile_rows, w), lambda i: (i, 0)),
        ),
        compiler_params=pltpu.CompilerParams(
            dimension_semantics=("parallel",),
            vmem_limit_bytes=vmem_limit),
        cost_estimate=cost,
        # TODO(synk): pipeline_mode=pl.Buffered(1) on the constant-index parameter specs
        # would drop their second VMEM buffer; negligible at D=32 so left at the default.
    )(xp, gamma_r, beta_r, w1_b, b1_r, w2_r, seg, b2_s)

    if n_pad != n_rows:
        out = out[:n_rows]
    out = out.reshape(n_g, d)                       # free reshape back to (rows, D)
    if n_g != n:
        out = out[:n]
    return out.reshape(orig_shape)


def feature_attention_ref(x, gamma, beta, w1, b1, w2, b2):
    """Pure-JAX reference mirroring the PyTorch forward."""
    xf = x.astype(jnp.float32)
    mean = jnp.mean(xf, axis=-1, keepdims=True)
    var = jnp.mean((xf - mean) ** 2, axis=-1, keepdims=True)
    x_norm = (xf - mean) / jnp.sqrt(var + LN_EPS) * gamma + beta
    h = jnp.tanh(x_norm @ w1 + b1)
    scores = jax.nn.sigmoid(h @ w2 + b2)
    return (xf + xf * scores).astype(x.dtype)


if __name__ == "__main__":
    D = 32  # feature axis for LayerNorm / Linear
    key = jax.random.PRNGKey(0)
    kx1, kx2, kw1, kb1, kw2, kb2, kg, kbt = jax.random.split(key, 8)

    # Deterministic synthetic parameters (nn.LayerNorm(dim), nn.Linear(dim, dim),
    # nn.Linear(dim, 1)).  Math layout: y = x @ W + b.
    gamma = 1.0 + 0.1 * jax.random.normal(kg, (D,), jnp.float32)
    beta = 0.1 * jax.random.normal(kbt, (D,), jnp.float32)
    scale1 = 1.0 / jnp.sqrt(jnp.float32(D))
    w1 = jax.random.uniform(kw1, (D, D), jnp.float32, -scale1, scale1)
    b1 = jax.random.uniform(kb1, (D,), jnp.float32, -scale1, scale1)
    w2 = jax.random.uniform(kw2, (D, 1), jnp.float32, -scale1, scale1)
    b2 = jax.random.uniform(kb2, (1,), jnp.float32, -scale1, scale1)

    # Case 1: tiny (batch=2, seq=8, dim=32) -> 4 lane-packed rows, single-step grid.
    x1 = jax.random.normal(kx1, (2, 8, D), jnp.float32)
    ref1 = feature_attention_ref(x1, gamma, beta, w1, b1, w2, b2)
    out1 = jax.block_until_ready(
        feature_attention(x1, gamma, beta, w1, b1, w2, b2, use_bf16_matmul=False))
    assert out1.shape == x1.shape and out1.dtype == x1.dtype
    assert jnp.allclose(out1, ref1, atol=1e-4, rtol=1e-4), "mismatch vs reference (f32)"

    # Fast path: bf16 MXU operands + EUP approx reciprocal in the sigmoid (looser tolerance).
    out1_fast = jax.block_until_ready(
        feature_attention(x1, gamma, beta, w1, b1, w2, b2,
                          use_bf16_matmul=True, approx_sigmoid=True))
    assert out1_fast.shape == x1.shape and out1_fast.dtype == x1.dtype
    assert jnp.allclose(out1_fast, ref1, atol=1e-1, rtol=1e-1), "mismatch vs reference (bf16)"

    # Case 2: more rows with a small block-byte target to exercise the multi-step,
    # lane-packed pipeline (even grid, divisor tile -> no padding copies).
    x2 = jax.random.normal(kx2, (8, 16, D), jnp.float32)
    ref2 = feature_attention_ref(x2, gamma, beta, w1, b1, w2, b2)
    out2 = jax.block_until_ready(
        feature_attention(x2, gamma, beta, w1, b1, w2, b2,
                          use_bf16_matmul=False, target_block_bytes=8 * 128 * 4))
    assert out2.shape == x2.shape and out2.dtype == x2.dtype
    assert jnp.allclose(out2, ref2, atol=1e-4, rtol=1e-4), "mismatch vs reference (tiled f32)"

    print("KERNEL_OK")
</pallas_src>

<mosaic_0001>
module attributes {stable_mosaic.version = 11 : i64} {
  func.func @_feature_attention_kernel(%arg0: i32, %arg1: memref<8x128xf32, #tpu.memory_space<vmem>>, %arg2: memref<1x128xf32, #tpu.memory_space<vmem>>, %arg3: memref<1x128xf32, #tpu.memory_space<vmem>>, %arg4: memref<128x128xf32, #tpu.memory_space<vmem>>, %arg5: memref<1x128xf32, #tpu.memory_space<vmem>>, %arg6: memref<1x128xf32, #tpu.memory_space<vmem>>, %arg7: memref<128x128xf32, #tpu.memory_space<vmem>>, %arg8: memref<1xf32, #tpu.memory_space<smem>>, %arg9: memref<8x128xf32, #tpu.memory_space<vmem>>) attributes {dimension_semantics = [#tpu.dimension_semantics<parallel>], iteration_bounds = array<i64: 1>, scalar_prefetch = 0 : i64, scratch_operands = 0 : i64, tpu.core_type = #tpu.core_type<tc>, window_params = [{transform_indices = @transform_0, window_bounds = array<i64: 8, 128>}, {pipeline_mode = #tpu.pipeline_mode<synchronous>, transform_indices = @transform_1, window_bounds = array<i64: 1, 128>}, {pipeline_mode = #tpu.pipeline_mode<synchronous>, transform_indices = @transform_2, window_bounds = array<i64: 1, 128>}, {pipeline_mode = #tpu.pipeline_mode<synchronous>, transform_indices = @transform_3, window_bounds = array<i64: 128, 128>}, {pipeline_mode = #tpu.pipeline_mode<synchronous>, transform_indices = @transform_4, window_bounds = array<i64: 1, 128>}, {pipeline_mode = #tpu.pipeline_mode<synchronous>, transform_indices = @transform_5, window_bounds = array<i64: 1, 128>}, {pipeline_mode = #tpu.pipeline_mode<synchronous>, transform_indices = @transform_6, window_bounds = array<i64: 128, 128>}, {transform_indices = @transform_7, window_bounds = array<i64: 1>}, {transform_indices = @transform_8, window_bounds = array<i64: 8, 128>}]} {
    %c0 = arith.constant 0 : index
    %c0_0 = arith.constant 0 : index
    %0 = vector.load %arg1[%c0, %c0_0] : memref<8x128xf32, #tpu.memory_space<vmem>>, vector<8x128xf32>
    %c0_1 = arith.constant 0 : index
    %c0_2 = arith.constant 0 : index
    %1 = vector.load %arg7[%c0_1, %c0_2] : memref<128x128xf32, #tpu.memory_space<vmem>>, vector<128x128xf32>
    %cst = arith.constant dense<0.000000e+00> : vector<8x128xf32>
    %2 = tpu.matmul %0, %1, %cst {dimension_numbers = #tpu.dot_dimension_numbers<[1], [0], [0], [1], [0, 0, 1, 1], [], []>} : vector<8x128xf32>, vector<128x128xf32>, vector<8x128xf32> -> vector<8x128xf32>
    %cst_3 = arith.constant 3.125000e-02 : f32
    %3 = vector.broadcast %cst_3 : f32 to vector<8x128xf32>
    %4 = arith.mulf %2, %3 : vector<8x128xf32>
    %5 = arith.subf %0, %4 : vector<8x128xf32>
    %6 = arith.mulf %5, %5 : vector<8x128xf32>
    %cst_4 = arith.constant dense<0.000000e+00> : vector<8x128xf32>
    %7 = tpu.matmul %6, %1, %cst_4 {dimension_numbers = #tpu.dot_dimension_numbers<[1], [0], [0], [1], [0, 0, 1, 1], [], []>} : vector<8x128xf32>, vector<128x128xf32>, vector<8x128xf32> -> vector<8x128xf32>
    %cst_5 = arith.constant 3.125000e-02 : f32
    %8 = vector.broadcast %cst_5 : f32 to vector<8x128xf32>
    %9 = arith.mulf %7, %8 : vector<8x128xf32>
    %cst_6 = arith.constant 9.99999974E-6 : f32
    %10 = vector.broadcast %cst_6 : f32 to vector<8x128xf32>
    %11 = arith.addf %9, %10 : vector<8x128xf32>
    %12 = math.rsqrt %11 : vector<8x128xf32>
    %13 = arith.mulf %5, %12 : vector<8x128xf32>
    %c0_7 = arith.constant 0 : index
    %c0_8 = arith.constant 0 : index
    %14 = vector.load %arg2[%c0_7, %c0_8] : memref<1x128xf32, #tpu.memory_space<vmem>>, vector<1x128xf32>
    %15 = vector.broadcast %14 : vector<1x128xf32> to vector<8x128xf32>
    %16 = arith.mulf %13, %15 : vector<8x128xf32>
    %c0_9 = arith.constant 0 : index
    %c0_10 = arith.constant 0 : index
    %17 = vector.load %arg3[%c0_9, %c0_10] : memref<1x128xf32, #tpu.memory_space<vmem>>, vector<1x128xf32>
    %18 = vector.broadcast %17 : vector<1x128xf32> to vector<8x128xf32>
    %19 = arith.addf %16, %18 : vector<8x128xf32>
    %c0_11 = arith.constant 0 : index
    %c0_12 = arith.constant 0 : index
    %20 = vector.load %arg4[%c0_11, %c0_12] : memref<128x128xf32, #tpu.memory_space<vmem>>, vector<128x128xf32>
    %cst_13 = arith.constant dense<0.000000e+00> : vector<8x128xf32>
    %21 = tpu.matmul %19, %20, %cst_13 {dimension_numbers = #tpu.dot_dimension_numbers<[1], [0], [0], [1], [0, 0, 1, 1], [], []>} : vector<8x128xf32>, vector<128x128xf32>, vector<8x128xf32> -> vector<8x128xf32>
    %c0_14 = arith.constant 0 : index
    %c0_15 = arith.constant 0 : index
    %22 = vector.load %arg5[%c0_14, %c0_15] : memref<1x128xf32, #tpu.memory_space<vmem>>, vector<1x128xf32>
    %23 = vector.broadcast %22 : vector<1x128xf32> to vector<8x128xf32>
    %24 = arith.addf %21, %23 : vector<8x128xf32>
    %25 = math.tanh %24 : vector<8x128xf32>
    %c0_16 = arith.constant 0 : index
    %c0_17 = arith.constant 0 : index
    %26 = vector.load %arg6[%c0_16, %c0_17] : memref<1x128xf32, #tpu.memory_space<vmem>>, vector<1x128xf32>
    %27 = vector.broadcast %26 : vector<1x128xf32> to vector<8x128xf32>
    %28 = arith.mulf %25, %27 : vector<8x128xf32>
    %c0_18 = arith.constant 0 : index
    %c0_19 = arith.constant 0 : index
    %29 = vector.load %arg7[%c0_18, %c0_19] : memref<128x128xf32, #tpu.memory_space<vmem>>, vector<128x128xf32>
    %cst_20 = arith.constant dense<0.000000e+00> : vector<8x128xf32>
    %30 = tpu.matmul %28, %29, %cst_20 {dimension_numbers = #tpu.dot_dimension_numbers<[1], [0], [0], [1], [0, 0, 1, 1], [], []>} : vector<8x128xf32>, vector<128x128xf32>, vector<8x128xf32> -> vector<8x128xf32>
    %c0_21 = arith.constant 0 : index
    %31 = memref.load %arg8[%c0_21] : memref<1xf32, #tpu.memory_space<smem>>
    %32 = vector.broadcast %31 : f32 to vector<8x128xf32>
    %33 = arith.addf %30, %32 : vector<8x128xf32>
    %34 = arith.negf %33 : vector<8x128xf32>
    %35 = math.exp %34 : vector<8x128xf32>
    %cst_22 = arith.constant 1.000000e+00 : f32
    %36 = vector.broadcast %cst_22 : f32 to vector<8x128xf32>
    %37 = arith.addf %36, %35 : vector<8x128xf32>
    %38 = arith.divf %36, %37 : vector<8x128xf32>
    %cst_23 = arith.constant 1.000000e+00 : f32
    %39 = vector.broadcast %cst_23 : f32 to vector<8x128xf32>
    %40 = arith.addf %39, %38 : vector<8x128xf32>
    %41 = arith.mulf %0, %40 : vector<8x128xf32>
    %c0_24 = arith.constant 0 : index
    %c0_25 = arith.constant 0 : index
    %42 = vector.load %arg9[%c0_24, %c0_25] : memref<8x128xf32, #tpu.memory_space<vmem>>, vector<8x128xf32>
    tpu.vector_store %arg9[%c0_24, %c0_25], %41 {strides = array<i32>} : memref<8x128xf32, #tpu.memory_space<vmem>>, vector<8x128xf32>,
    return
  }
  func.func @transform_0(%arg0: i32) -> (i32, i32) {
    %c0_i32 = arith.constant 0 : i32
    %c0_i32_0 = arith.constant 0 : i32
    return %arg0, %c0_i32 : i32, i32
  }
  func.func @transform_1(%arg0: i32) -> (i32, i32) {
    %c0_i32 = arith.constant 0 : i32
    %c0_i32_0 = arith.constant 0 : i32
    %c0_i32_1 = arith.constant 0 : i32
    return %c0_i32, %c0_i32_0 : i32, i32
  }
  func.func @transform_2(%arg0: i32) -> (i32, i32) {
    %c0_i32 = arith.constant 0 : i32
    %c0_i32_0 = arith.constant 0 : i32
    %c0_i32_1 = arith.constant 0 : i32
    return %c0_i32, %c0_i32_0 : i32, i32
  }
  func.func @transform_3(%arg0: i32) -> (i32, i32) {
    %c0_i32 = arith.constant 0 : i32
    %c0_i32_0 = arith.constant 0 : i32
    %c0_i32_1 = arith.constant 0 : i32
    return %c0_i32, %c0_i32_0 : i32, i32
  }
  func.func @transform_4(%arg0: i32) -> (i32, i32) {
    %c0_i32 = arith.constant 0 : i32
    %c0_i32_0 = arith.constant 0 : i32
    %c0_i32_1 = arith.constant 0 : i32
    return %c0_i32, %c0_i32_0 : i32, i32
  }
  func.func @transform_5(%arg0: i32) -> (i32, i32) {
    %c0_i32 = arith.constant 0 : i32
    %c0_i32_0 = arith.constant 0 : i32
    %c0_i32_1 = arith.constant 0 : i32
    return %c0_i32, %c0_i32_0 : i32, i32
  }
  func.func @transform_6(%arg0: i32) -> (i32, i32) {
    %c0_i32 = arith.constant 0 : i32
    %c0_i32_0 = arith.constant 0 : i32
    %c0_i32_1 = arith.constant 0 : i32
    return %c0_i32, %c0_i32_0 : i32, i32
  }
  func.func @transform_7(%arg0: i32) -> i32 {
    %c0_i32 = arith.constant 0 : i32
    %c0_i32_0 = arith.constant 0 : i32
    return %c0_i32 : i32
  }
  func.func @transform_8(%arg0: i32) -> (i32, i32) {
    %c0_i32 = arith.constant 0 : i32
    %c0_i32_0 = arith.constant 0 : i32
    return %arg0, %c0_i32 : i32, i32
  }
}

</mosaic_0001>

<bundles_post_ra>
// kernel: tpu_custom_call.1
= control target key start
LH: loop header
LB: loop body
LE: loop exit
PB: predicated region body
PF: predicated region fallthrough
CT: control target
= control target key end

     0   :  { %14 = vsyncpa [#allocation4], 0  ;;  %s996_s0 = inlined_call_operand.hbm [shape: f32[8,128], index: 0, kind: input, shape index: {}]   ;;  %s997_s1 = inlined_call_operand.vmem [shape: f32[1,128], index: 1, kind: input, shape index: {}]   ;;  %s998_s2 = inlined_call_operand.vmem [shape: f32[1,128], index: 2, kind: input, shape index: {}]   ;;  %s999_s3 = inlined_call_operand.hbm [shape: f32[128,128], index: 3, kind: input, shape index: {}]   ;;  %s1000_s4 = inlined_call_operand.vmem [shape: f32[1,128], index: 4, kind: input, shape index: {}]   ;;  %s1001_s5 = inlined_call_operand.vmem [shape: f32[1,128], index: 5, kind: input, shape index: {}]   ;;  %s1002_s6 = inlined_call_operand.hbm [shape: f32[128,128], index: 6, kind: input, shape index: {}]   ;;  %s1003_s7 = inlined_call_operand.<no memory space> [shape: f32[1], index: 7, kind: input, shape index: {}]   ;;  %s1004_s8 = inlined_call_operand.hbm [shape: f32[8,128], index: 8, kind: output, shape index: {}]  }
   0x1   :  { %15 = vsyncpa [#allocation7], 0 }
   0x2   :  { %16 = vsyncpa [#allocation5], 0  ;;  %s764_s27 = smov [#allocation6]  }
   0x3   :  { %s36_s28 = sshll.u32 %s764_s27, 4  ;;  %s37_s28 = int_to_ptr.vmem [resolvable:$true] %s36_s28 }
   0x4   :  { %s686_s29 = scalar_lea.vmem %s37_s28, 2048  ;;  %p691_p1 = scmp.lt.s32.totalorder %s37_s28, %s37_s28 }
   0x5   :  { %p687_p0 = scmp.ne.s32.totalorder %s37_s28, %s686_s29  ;;  %p692_p2 = scmp.lt.s32.totalorder %s686_s29, %s686_s29 }
   0x7   :  { %p693_p3 = por %p692_p2, %p691_p1 }
   0x9   :  { %p694_p4 = pnand %p693_p3, %p687_p0 }
   0xb   :  { %697 = shalt.err (!%p694_p4)
}
   0xc   :  { %s765_s30 = smov 128   ;;  %s766_s9 = smov 8  }
   0xd   :  { %42 = dma.hbm_to_vmem [thread:$0]  %s999_s3, 2048, %s37_s28, [#allocation7], %s765_s30, %s765_s30, %s766_s9  }
   0xe   :  { %s767_s12 = smov [#allocation3]   ;;  %s768_s14 = smov [#allocation8]  }
   0xf   :  { %s23_s13 = sshll.u32 %s767_s12, 4  ;;  %s52_s15 = sshll.u32 %s768_s14, 4  ;;  %s24_s13 = int_to_ptr.vmem [resolvable:$true] %s23_s13  ;;  %s53_s15 = int_to_ptr.vmem [resolvable:$true] %s52_s15 }
  0x10   :  { %s706_s16 = scalar_lea.vmem %s24_s13, 128  ;;  %p711_p6 = scmp.lt.s32.totalorder %s24_s13, %s24_s13 }
  0x11   :  { %p707_p5 = scmp.ne.s32.totalorder %s24_s13, %s706_s16  ;;  %p712_p7 = scmp.lt.s32.totalorder %s706_s16, %s706_s16 }
  0x13   :  { %p713_p8 = por %p712_p7, %p711_p6 }
  0x15   :  { %p714_p9 = pnand %p713_p8, %p707_p5 }
  0x17   :  { %717 = shalt.err (!%p714_p9)
}
  0x18   :  { %26 = dma.hbm_to_vmem [thread:$0]  %s996_s0, 128, %s24_s13, [#allocation4]  }
  0x19   :  { %s726_s19 = scalar_lea.vmem %s53_s15, 2048  ;;  %p731_p11 = scmp.lt.s32.totalorder %s53_s15, %s53_s15 }
  0x1a   :  { %p727_p10 = scmp.ne.s32.totalorder %s53_s15, %s726_s19  ;;  %p732_p12 = scmp.lt.s32.totalorder %s726_s19, %s726_s19 }
  0x1c   :  { %p733_p13 = por %p732_p12, %p731_p11 }
  0x1e   :  { %p734_p0 = pnand %p733_p13, %p727_p10 }
  0x20   :  { %737 = shalt.err (!%p734_p0)
}
  0x21   :  { %58 = dma.hbm_to_vmem [thread:$0]  %s1002_s6, 2048, %s53_s15, [#allocation7], %s765_s30, %s765_s30, %s766_s9  }
  0x22   :  { %758 = dma.done.wait [#allocation4], 128  }
  0x23   :  { %759 = vsyncadd [#allocation4], 4294967168 }
  0x24   :  { %760 = dma.done.wait [#allocation7], 4096  }
  0x25   :  { %761 = vsyncadd [#allocation7], 4294963200  ;;  %v769_v0 = vmov 0.0   ;;  %vm770_vm0 = vmmov 0   ;;  %v832_v1 = vld [vmem:[#allocation8 + $0x78] sm:$0xff]  ;;  %v834_v2 = vld [vmem:[#allocation8 + $0x70] sm:$0xff]  ;;  %v353_v56 = vstv %s1003_s7 }
  0x26   :  { %522 = vmatprep.subr.mxu0 %v769_v0  ;;  %554 = vmatprep.mubr.msk.f32.mxu0 %vm770_vm0, %v769_v0  ;;  %v839_v3 = vld [vmem:[#allocation8 + $0x68] sm:$0xff]  ;;  %v845_v4 = vld [vmem:[#allocation8 + $0x60] sm:$0xff]  ;;  %v851_v5 = vld [vmem:[#allocation8 + $0x58] sm:$0xff] }
  0x27   :  { %557 = vmatprep.subr.mxu1 %v769_v0  ;;  %589 = vmatprep.mubr.msk.f32.mxu1 %vm770_vm0, %v769_v0  ;;  %v857_v6 = vld [vmem:[#allocation8 + $0x50] sm:$0xff]  ;;  %v863_v7 = vld [vmem:[#allocation8 + $0x48] sm:$0xff]  ;;  %v869_v8 = vld [vmem:[#allocation8 + $0x40] sm:$0xff] }
  0x28   :  { %523 = vmatpush3.msra.mxu0 %v832_v1  ;;  %558 = vmatpush3.msra.mxu1 %v832_v1  ;;  %v875_v9 = vld [vmem:[#allocation8 + $0x38] sm:$0xff]  ;;  %v881_v10 = vld [vmem:[#allocation8 + $0x30] sm:$0xff]  ;;  %v887_v11 = vld [vmem:[#allocation8 + $0x28] sm:$0xff] }
  0x29   :  { %524 = vmatprep.subr.mxu0 %v769_v0  ;;  %559 = vmatprep.subr.mxu1 %v769_v0  ;;  %v893_v12 = vld [vmem:[#allocation8 + $0x20] sm:$0xff]  ;;  %v899_v13 = vld [vmem:[#allocation8 + $0x18] sm:$0xff]  ;;  %v905_v14 = vld [vmem:[#allocation8 + $0x10] sm:$0xff] }
  0x2a   :  { %525 = vmatpush3.msra.mxu0 %v834_v2  ;;  %560 = vmatpush3.msra.mxu1 %v834_v2  ;;  %v72_v15 = vld [vmem:[#allocation8 + $0x8] sm:$0xff]  ;;  %v71_v16 = vld [vmem:[#allocation8] sm:$0xff]  ;;  %v916_v17 = vld [vmem:[#allocation3] sm:$0xff] }
  0x2b   :  { %526 = vmatprep.subr.mxu0 %v769_v0  ;;  %561 = vmatprep.subr.mxu1 %v769_v0  ;;  %v265_v18 = vld [vmem:[#allocation6 + $0x78] sm:$0xff]  ;;  %v264_v19 = vld [vmem:[#allocation6 + $0x70] sm:$0xff]  ;;  %v263_v20 = vld [vmem:[#allocation6 + $0x68] sm:$0xff] }
  0x2c   :  { %527 = vmatpush3.msra.mxu0 %v839_v3  ;;  %562 = vmatpush3.msra.mxu1 %v839_v3  ;;  %v262_v26 = vld [vmem:[#allocation6 + $0x60] sm:$0xff]  ;;  %v261_v27 = vld [vmem:[#allocation6 + $0x58] sm:$0xff]  ;;  %v260_v28 = vld [vmem:[#allocation6 + $0x50] sm:$0xff] }
  0x2d   :  { %528 = vmatprep.subr.mxu0 %v769_v0  ;;  %563 = vmatprep.subr.mxu1 %v769_v0  ;;  %v259_v29 = vld [vmem:[#allocation6 + $0x48] sm:$0xff]  ;;  %v258_v30 = vld [vmem:[#allocation6 + $0x40] sm:$0xff]  ;;  %v257_v31 = vld [vmem:[#allocation6 + $0x38] sm:$0xff] }
  0x2e   :  { %529 = vmatpush3.msra.mxu0 %v845_v4  ;;  %564 = vmatpush3.msra.mxu1 %v845_v4  ;;  %v256_v32 = vld [vmem:[#allocation6 + $0x30] sm:$0xff]  ;;  %v255_v33 = vld [vmem:[#allocation6 + $0x28] sm:$0xff]  ;;  %v254_v34 = vld [vmem:[#allocation6 + $0x20] sm:$0xff] }
  0x2f   :  { %530 = vmatprep.subr.mxu0 %v769_v0  ;;  %565 = vmatprep.subr.mxu1 %v769_v0  ;;  %v253_v35 = vld [vmem:[#allocation6 + $0x18] sm:$0xff]  ;;  %v252_v36 = vld [vmem:[#allocation6 + $0x10] sm:$0xff]  ;;  %v251_v37 = vld [vmem:[#allocation6 + $0x8] sm:$0xff] }
  0x30   :  { %531 = vmatpush3.msra.mxu0 %v851_v5  ;;  %566 = vmatpush3.msra.mxu1 %v851_v5  ;;  %v250_v38 = vld [vmem:[#allocation6] sm:$0xff]  ;;  %v449_v44 = vld [vmem:[%s997_s1] ss:$0 sm:$0xff] }
  0x31   :  { %532 = vmatprep.subr.mxu0 %v769_v0  ;;  %567 = vmatprep.subr.mxu1 %v769_v0  ;;  %v450_v46 = vld [vmem:[%s998_s2] ss:$0 sm:$0xff] }
  0x32   :  { %533 = vmatpush3.msra.mxu0 %v857_v6  ;;  %568 = vmatpush3.msra.mxu1 %v857_v6  ;;  %v451_v49 = vld [vmem:[%s1000_s4] ss:$0 sm:$0xff]  ;;  %s771_s4 = smov [#allocation9]  }
  0x33   :  { %534 = vmatprep.subr.mxu0 %v769_v0  ;;  %569 = vmatprep.subr.mxu1 %v769_v0  ;;  %v452_v53 = vld [vmem:[%s1001_s5] ss:$0 sm:$0xff]  ;;  %s439_s27 = sshll.u32 %s771_s4, 4  ;;  %s440_s27 = int_to_ptr.vmem [resolvable:$true] %s439_s27 }
  0x34   :  { %535 = vmatpush3.msra.mxu0 %v863_v7  ;;  %570 = vmatpush3.msra.mxu1 %v863_v7  ;;  %s738_s5 = scalar_lea.vmem %s440_s27, 128  ;;  %p743_p2 = scmp.lt.s32.totalorder %s440_s27, %s440_s27 }
  0x35   :  { %536 = vmatprep.subr.mxu0 %v769_v0  ;;  %571 = vmatprep.subr.mxu1 %v769_v0  ;;  %p739_p1 = scmp.ne.s32.totalorder %s440_s27, %s738_s5  ;;  %p744_p3 = scmp.lt.s32.totalorder %s738_s5, %s738_s5 }
  0x36   :  { %537 = vmatpush3.msra.mxu0 %v869_v8  ;;  %572 = vmatpush3.msra.mxu1 %v869_v8 }
  0x37   :  { %538 = vmatprep.subr.mxu0 %v769_v0  ;;  %573 = vmatprep.subr.mxu1 %v769_v0  ;;  %p745_p4 = por %p744_p3, %p743_p2 }
  0x38   :  { %539 = vmatpush3.msra.mxu0 %v875_v9  ;;  %574 = vmatpush3.msra.mxu1 %v875_v9 }
  0x39   :  { %540 = vmatprep.subr.mxu0 %v769_v0  ;;  %575 = vmatprep.subr.mxu1 %v769_v0  ;;  %p746_p5 = pnand %p745_p4, %p739_p1 }
  0x3a   :  { %541 = vmatpush3.msra.mxu0 %v881_v10  ;;  %576 = vmatpush3.msra.mxu1 %v881_v10 }
  0x3b   :  { %542 = vmatprep.subr.mxu0 %v769_v0  ;;  %577 = vmatprep.subr.mxu1 %v769_v0 }
  0x3c   :  { %543 = vmatpush3.msra.mxu0 %v887_v11  ;;  %578 = vmatpush3.msra.mxu1 %v887_v11 }
  0x3d   :  { %544 = vmatprep.subr.mxu0 %v769_v0  ;;  %579 = vmatprep.subr.mxu1 %v769_v0 }
  0x3e   :  { %545 = vmatpush3.msra.mxu0 %v893_v12  ;;  %580 = vmatpush3.msra.mxu1 %v893_v12 }
  0x3f   :  { %546 = vmatprep.subr.mxu0 %v769_v0  ;;  %581 = vmatprep.subr.mxu1 %v769_v0 }
  0x40   :  { %547 = vmatpush3.msra.mxu0 %v899_v13  ;;  %582 = vmatpush3.msra.mxu1 %v899_v13 }
  0x41   :  { %548 = vmatprep.subr.mxu0 %v769_v0  ;;  %583 = vmatprep.subr.mxu1 %v769_v0 }
  0x42   :  { %549 = vmatpush3.msra.mxu0 %v905_v14  ;;  %584 = vmatpush3.msra.mxu1 %v905_v14 }
  0x43   :  { %550 = vmatprep.subr.mxu0 %v769_v0  ;;  %585 = vmatprep.subr.mxu1 %v769_v0 }
  0x44   :  { %551 = vmatpush3.msra.mxu0 %v72_v15  ;;  %586 = vmatpush3.msra.mxu1 %v72_v15 }
  0x45   :  { %552 = vmatprep.subr.mxu0 %v769_v0  ;;  %587 = vmatprep.subr.mxu1 %v769_v0 }
  0x46   :  { %553 = vmatpush3.msra.mxu0 %v71_v16  ;;  %588 = vmatpush3.msra.mxu1 %v71_v16 }
  0x47   :  { %555 = vmatmul.mubr.f32.vlgmr.msra.gmra.mxu0 %v916_v17  ;;  %592 = vmatprep.subr.mxu0 %v769_v0 }
  0x48   :  { %624 = vmatprep.mubr.msk.f32.mxu0 %vm770_vm0, %v769_v0  ;;  %627 = vmatprep.subr.mxu1 %v769_v0 }
  0x49   :  { %593 = vmatpush3.msra.mxu0 %v265_v18 }
  0x4a   :  { %594 = vmatprep.subr.mxu0 %v769_v0 }
  0x4b   :  { %595 = vmatpush3.msra.mxu0 %v264_v19 }
  0x4c   :  { %596 = vmatprep.subr.mxu0 %v769_v0 }
  0x4d   :  { %597 = vmatpush3.msra.mxu0 %v263_v20 }
  0x4e   :  { %598 = vmatprep.subr.mxu0 %v769_v0 }
  0x4f   :  { %599 = vmatpush3.msra.mxu0 %v262_v26 }
  0x50   :  { %600 = vmatprep.subr.mxu0 %v769_v0 }
  0x51   :  { %601 = vmatpush3.msra.mxu0 %v261_v27 }
  0x52   :  { %602 = vmatprep.subr.mxu0 %v769_v0 }
  0x53   :  { %603 = vmatpush3.msra.mxu0 %v260_v28 }
  0x54   :  { %604 = vmatprep.subr.mxu0 %v769_v0 }
  0x55   :  { %605 = vmatpush3.msra.mxu0 %v259_v29 }
  0x56   :  { %606 = vmatprep.subr.mxu0 %v769_v0 }
  0x57   :  { %607 = vmatpush3.msra.mxu0 %v258_v30 }
  0x58   :  { %608 = vmatprep.subr.mxu0 %v769_v0 }
  0x59   :  { %609 = vmatpush3.msra.mxu0 %v257_v31 }
  0x5a   :  { %610 = vmatprep.subr.mxu0 %v769_v0 }
  0x5b   :  { %611 = vmatpush3.msra.mxu0 %v256_v32 }
  0x5c   :  { %612 = vmatprep.subr.mxu0 %v769_v0 }
  0x5d   :  { %613 = vmatpush3.msra.mxu0 %v255_v33 }
  0x5e   :  { %614 = vmatprep.subr.mxu0 %v769_v0 }
  0x5f   :  { %615 = vmatpush3.msra.mxu0 %v254_v34 }
  0x60   :  { %616 = vmatprep.subr.mxu0 %v769_v0 }
  0x61   :  { %617 = vmatpush3.msra.mxu0 %v253_v35 }
  0x62   :  { %618 = vmatprep.subr.mxu0 %v769_v0 }
  0x63   :  { %619 = vmatpush3.msra.mxu0 %v252_v36 }
  0x64   :  { %620 = vmatprep.subr.mxu0 %v769_v0 }
  0x65   :  { %621 = vmatpush3.msra.mxu0 %v251_v37 }
  0x66   :  { %622 = vmatprep.subr.mxu0 %v769_v0 }
  0x67   :  { %623 = vmatpush3.msra.mxu0 %v250_v38 }
 0x107   :  { %v153_v21 = vpop.f32.mrf.mxu0 }
 0x108   :  { %v157_v22 = vmul.f32 0.03125, %v153_v21 }
 0x109   :  { %v556_v23 = vpop.f32.mrf.mxu0 }
 0x10a   :  { %v929_v24 = vsub.f32 %v916_v17, %v157_v22 }
 0x10c   :  { %v159_v25 = vmul.f32 %v929_v24, %v929_v24 }
 0x10e   :  { %590 = vmatmul.mubr.f32.vlgmr.msra.gmra.mxu1 %v159_v25 }
 0x10f   :  { %628 = vmatpush3.msra.mxu1 %v832_v1  ;;  %659 = vmatprep.mubr.msk.f32.mxu1 %vm770_vm0, %v769_v0 }
 0x110   :  { %629 = vmatprep.subr.mxu1 %v769_v0 }
 0x111   :  { %630 = vmatpush3.msra.mxu1 %v834_v2 }
 0x112   :  { %631 = vmatprep.subr.mxu1 %v769_v0 }
 0x113   :  { %632 = vmatpush3.msra.mxu1 %v839_v3 }
 0x114   :  { %633 = vmatprep.subr.mxu1 %v769_v0 }
 0x115   :  { %634 = vmatpush3.msra.mxu1 %v845_v4 }
 0x116   :  { %635 = vmatprep.subr.mxu1 %v769_v0 }
 0x117   :  { %636 = vmatpush3.msra.mxu1 %v851_v5 }
 0x118   :  { %637 = vmatprep.subr.mxu1 %v769_v0 }
 0x119   :  { %638 = vmatpush3.msra.mxu1 %v857_v6 }
 0x11a   :  { %639 = vmatprep.subr.mxu1 %v769_v0 }
 0x11b   :  { %640 = vmatpush3.msra.mxu1 %v863_v7 }
 0x11c   :  { %641 = vmatprep.subr.mxu1 %v769_v0 }
 0x11d   :  { %642 = vmatpush3.msra.mxu1 %v869_v8 }
 0x11e   :  { %643 = vmatprep.subr.mxu1 %v769_v0 }
 0x11f   :  { %644 = vmatpush3.msra.mxu1 %v875_v9 }
 0x120   :  { %645 = vmatprep.subr.mxu1 %v769_v0 }
 0x121   :  { %646 = vmatpush3.msra.mxu1 %v881_v10 }
 0x122   :  { %647 = vmatprep.subr.mxu1 %v769_v0 }
 0x123   :  { %648 = vmatpush3.msra.mxu1 %v887_v11 }
 0x124   :  { %649 = vmatprep.subr.mxu1 %v769_v0 }
 0x125   :  { %650 = vmatpush3.msra.mxu1 %v893_v12 }
 0x126   :  { %651 = vmatprep.subr.mxu1 %v769_v0 }
 0x127   :  { %652 = vmatpush3.msra.mxu1 %v899_v13 }
 0x128   :  { %653 = vmatprep.subr.mxu1 %v769_v0 }
 0x129   :  { %654 = vmatpush3.msra.mxu1 %v905_v14 }
 0x12a   :  { %655 = vmatprep.subr.mxu1 %v769_v0 }
 0x12b   :  { %656 = vmatpush3.msra.mxu1 %v72_v15 }
 0x12c   :  { %657 = vmatprep.subr.mxu1 %v769_v0 }
 0x12d   :  { %658 = vmatpush3.msra.mxu1 %v71_v16 }
 0x1ce   :  { %v226_v39 = vpop.f32.mrf.mxu1 }
 0x1cf   :  { %v230_v40 = vmul.f32 0.03125, %v226_v39 }
 0x1d0   :  { %v591_v41 = vpop.f32.mrf.mxu1 }
 0x1d1   :  { %v231_v42 = vadd.f32 1e-05, %v230_v40 }
 0x1d3   :  { %670 = vrsqrt.f32 %v231_v42 }
 0x1e0   :  { %v671_v43 = vpop.eup %670 }
 0x1e1   :  { %v233_v45 = vmul.f32 %v671_v43, %v929_v24 }
 0x1e3   :  { %v241_v47 = vmul.f32 %v449_v44, %v233_v45 }
 0x1e5   :  { %v249_v48 = vadd.f32 %v450_v46, %v241_v47 }
 0x1e7   :  { %625 = vmatmul.mubr.f32.vlgmr.msra.gmra.mxu0 %v249_v48 }
 0x2a7   :  { %v339_v50 = vpop.f32.mrf.mxu0 }
 0x2a8   :  { %v340_v51 = vadd.f32 %v451_v49, %v339_v50 }
 0x2a9   :  { %v626_v52 = vpop.f32.mrf.mxu0 }
 0x2aa   :  { %672 = vtanh.f32 %v340_v51 }
 0x2b7   :  { %v673_v54 = vpop.eup %672 }
 0x2b8   :  { %v351_v55 = vmul.f32 %v673_v54, %v452_v53 }
 0x2ba   :  { %660 = vmatmul.mubr.f32.vlgmr.msra.gmra.mxu1 %v351_v55 }
 0x37a   :  { %v420_v57 = vpop.f32.mrf.mxu1 }
 0x37b   :  { %v421_v58 = vadd.f32 %v420_v57, %v353_v56 }
 0x37c   :  { %v661_v59 = vpop.f32.mrf.mxu1 }
 0x37d   :  { %v453_v60 = vmul.f32 -1.442695, %v421_v58 }
 0x37f   :  { %674 = vpow2.f32 %v453_v60 }
 0x38c   :  { %v675_v61 = vpop.eup %674 }
 0x38d   :  { %v427_v62 = vadd.f32 1.0, %v675_v61 }
 0x38f   :  { %676 = vrcp.f32 %v427_v62 }
 0x39c   :  { %v677_v63 = vpop.eup %676 }
 0x39d   :  { %v430_v0 = vadd.f32 1.0, %v677_v63 }
 0x39f   :  { %v431_v1 = vmul.f32 %v430_v0, %v916_v17 }
 0x3a1   :  { %432 = vst [vmem:[#allocation9] sm:$0xff] %v431_v1 }
 0x3a2   :  { %749 = shalt.err (!%p746_p5)
}
 0x3a3   :  { %442 = dma.vmem_to_hbm [thread:$0]  %s440_s27, 128, %s1004_s8, [#allocation5]  }
 0x3a4   :  { %762 = dma.done.wait [#allocation5], 128  }
 0x3a5   :  { %763 = vsyncadd [#allocation5], 4294967168 }
 0x3a6   :  { %446 = vsyncpa [#allocation4], 1 }
 0x3a7   :  { %447 = vsyncpa [#allocation7], 1 }
 0x3a8   :  { %448 = vsyncpa [#allocation5], 1 }

</bundles_post_ra>
